<compile_context>
chip_gen: v7x
topology: tpu7x:2x2x1
jax: 0.10.0
libtpu: 0.0.40
codegen_flags: <defaults>
</compile_context>

<pallas_src>
import functools

import jax
import jax.numpy as jnp
from jax.experimental import pallas as pl
from jax.experimental.pallas import tpu as pltpu

_LANES = 128
_SUBLANES = 8
_TARGET_TILE_ROWS = 8192   # 8192 x 128 x 4 B = 4 MiB per f32 input block
_CHUNK_ROWS = 512          # in-kernel accumulation chunk (256 KiB f32)


def _round_up(x, m):
    return -(-x // m) * m


def _elementwise_bce(p, t):
    # torch.nn.functional.binary_cross_entropy semantics: log terms clamped at
    # -100 so that e.g. (p=0, t=0) contributes exactly 0 instead of NaN.
    log_p = jnp.maximum(jnp.log(p), -100.0)
    log_1mp = jnp.maximum(jnp.log(1.0 - p), -100.0)
    # == -(t*log_p + (1-t)*log_1mp), with one fewer mul/sub per element.
    return -(log_1mp + t * (log_p - log_1mp))


def _dicebce_partials_kernel(pred_ref, tgt_ref, out_ref, *, chunk_rows,
                             num_chunks, tile_rows, mask_last,
                             last_valid_rows):
    """Per-block partial-sum planes: rows 0-7 = p*t, 8-15 = p+t, 16-23 = bce."""
    out_ref[...] = jnp.zeros_like(out_ref)

    if mask_last:
        limit = jnp.where(pl.program_id(0) == pl.num_programs(0) - 1,
                          last_valid_rows, tile_rows)

    def _fold(x):
        # (chunk_rows,128) -> (chunk_rows//8, 8, 128) summed over axis 0:
        # pure VPU vreg adds, no XLU cross-lane work per chunk.
        return x.reshape(-1, _SUBLANES, _LANES).sum(axis=0)

    @pl.loop(0, num_chunks)
    def _chunk(c):
        start = pl.multiple_of(c * chunk_rows, chunk_rows)

        def _accumulate():
            p = pred_ref[pl.ds(start, chunk_rows), :].astype(jnp.float32)
            t = tgt_ref[pl.ds(start, chunk_rows), :].astype(jnp.float32)
            if mask_last:
                # Zero rows past the end of the (rows,128) slab BEFORE any
                # log/multiply so OOB garbage cannot produce NaN/Inf.
                row = jax.lax.broadcasted_iota(jnp.int32, p.shape, 0) + start
                keep = row < limit
                p = jnp.where(keep, p, 0.0)
                t = jnp.where(keep, t, 0.0)
            out_ref[0:_SUBLANES, :] += _fold(p * t)
            out_ref[_SUBLANES:2 * _SUBLANES, :] += _fold(p + t)
            out_ref[2 * _SUBLANES:3 * _SUBLANES, :] += _fold(
                _elementwise_bce(p, t))

        if mask_last:
            # Skip chunks entirely past the valid rows (only possible on the
            # last, partial block).
            pl.when(start < limit)(_accumulate)
        else:
            _accumulate()


def _partial_sums_pallas(p2d, t2d, rows):
    """Returns (sum(p*t), sum(p)+sum(t), sum(bce)) over a (rows,128) slab."""
    # ---- tiling selection (all static Python ints) -------------------------
    if rows >= 2 * _CHUNK_ROWS:
        chunk_rows = _CHUNK_ROWS
    else:
        # Small inputs: still aim for 2 blocks so both v7x TensorCores work.
        chunk_rows = max(_SUBLANES, _round_up(pl.cdiv(rows, 2), _SUBLANES))
    chunks_total = pl.cdiv(rows, chunk_rows)
    max_chunks_per_tile = max(1, _TARGET_TILE_ROWS // chunk_rows)
    num_blocks = max(pl.cdiv(chunks_total, max_chunks_per_tile),
                     min(chunks_total, 2))
    chunks_per_tile = pl.cdiv(chunks_total, num_blocks)   # balance the blocks
    tile_rows = chunks_per_tile * chunk_rows
    num_blocks = pl.cdiv(rows, tile_rows)
    last_valid_rows = rows - (num_blocks - 1) * tile_rows
    mask_last = (last_valid_rows != tile_rows)

    kernel = functools.partial(
        _dicebce_partials_kernel, chunk_rows=chunk_rows,
        num_chunks=chunks_per_tile, tile_rows=tile_rows,
        mask_last=mask_last, last_valid_rows=last_valid_rows)

    partials = pl.pallas_call(
        kernel,
        out_shape=jax.ShapeDtypeStruct((num_blocks * 3 * _SUBLANES, _LANES),
                                       jnp.float32),
        grid_spec=pltpu.PrefetchScalarGridSpec(
            num_scalar_prefetch=0,
            grid=(num_blocks,),
            in_specs=[
                pl.BlockSpec((tile_rows, _LANES), lambda i: (i, 0)),
                pl.BlockSpec((tile_rows, _LANES), lambda i: (i, 0)),
            ],
            out_specs=pl.BlockSpec((3 * _SUBLANES, _LANES), lambda i: (i, 0)),
        ),
        compiler_params=pltpu.CompilerParams(
            dimension_semantics=("parallel",),
            vmem_limit_bytes=32 * 1024 * 1024),
    )(p2d, t2d)

    # (num_blocks*24, 128) -> (3,): tiny reduction, plain JAX.
    return partials.reshape(num_blocks, 3, _SUBLANES * _LANES).sum(axis=(0, 2))


@functools.partial(jax.jit, static_argnames=("reduction",))
def dice_bce_loss(prediction, target, eps=1e-6, reduction="mean",
                  bce_weight=1.0, dice_weight=1.0):
    assert prediction.shape == target.shape
    if reduction not in ("mean", "sum"):
        raise ValueError("only 'mean' and 'sum' reductions are supported")
    # TODO(synk): reduction='none' (per-element BCE tensor output) is not
    # implemented; the PyTorch default ('mean') is what this kernel reproduces.

    n = prediction.size
    flat_p = prediction.reshape(-1)   # free reshape (bitcast), keeps dtype
    flat_t = target.reshape(-1)

    n_main = (n // _LANES) * _LANES
    intersection = jnp.float32(0.0)
    union = jnp.float32(0.0)
    bce_sum = jnp.float32(0.0)

    if n_main > 0:
        rows = n_main // _LANES
        if n_main == n:
            p2d = flat_p.reshape(rows, _LANES)       # free reshape, no copy
            t2d = flat_t.reshape(rows, _LANES)
        else:
            # TODO(synk): when n % 128 != 0 this prefix slice materializes a
            # near-full-size copy of each input before the pallas_call; a
            # fully copy-free ragged path needs a 1D / manual-DMA kernel.
            p2d = flat_p[:n_main].reshape(rows, _LANES)
            t2d = flat_t[:n_main].reshape(rows, _LANES)

        sums = _partial_sums_pallas(p2d, t2d, rows)
        intersection = intersection + sums[0]
        union = union + sums[1]
        bce_sum = bce_sum + sums[2]

    if n_main < n:
        # <128-element ragged tail: negligible work, reduce it in plain JAX.
        p_tail = flat_p[n_main:].astype(jnp.float32)
        t_tail = flat_t[n_main:].astype(jnp.float32)
        intersection = intersection + jnp.sum(p_tail * t_tail)
        union = union + jnp.sum(p_tail + t_tail)
        bce_sum = bce_sum + jnp.sum(_elementwise_bce(p_tail, t_tail))

    # Matches the reference nn.Module exactly:
    #   dice = 1 - 2*I / clamp(sum_p + sum_t, min=eps)
    #   loss = (w_bce*BCE + w_dice*dice) / (w_bce + w_dice)
    dice_loss = 1.0 - 2.0 * intersection / jnp.maximum(union, eps)
    bce = bce_sum / n if reduction == "mean" else bce_sum
    return (bce_weight * bce + dice_weight * dice_loss) / (bce_weight + dice_weight)


def _reference(prediction, target, eps=1e-6, bce_weight=1.0, dice_weight=1.0):
    p = prediction.astype(jnp.float32)
    t = target.astype(jnp.float32)
    intersection = jnp.sum(p * t)
    union = jnp.sum(p) + jnp.sum(t)
    dice = 1.0 - 2.0 * intersection / jnp.maximum(union, eps)
    log_p = jnp.maximum(jnp.log(p), -100.0)
    log_1mp = jnp.maximum(jnp.log(1.0 - p), -100.0)
    bce = jnp.mean(-(t * log_p + (1.0 - t) * log_1mp))
    return (bce_weight * bce + dice_weight * dice) / (bce_weight + dice_weight)


if __name__ == "__main__":
    key = jax.random.PRNGKey(0)
    k_pred, k_tgt = jax.random.split(key)

    # Small segmentation-style NCHW inputs: (B, C, H, W) = (2, 4, 16, 16).
    shape = (2, 4, 16, 16)
    prediction = jax.random.uniform(k_pred, shape, jnp.float32,
                                    minval=0.01, maxval=0.99)  # sigmoid-like (0,1)
    target = jax.random.bernoulli(k_tgt, 0.5, shape).astype(jnp.float32)

    loss = dice_bce_loss(prediction, target)
    loss = jax.block_until_ready(loss)

    ref = _reference(prediction, target)
    assert jnp.allclose(loss, ref, rtol=1e-5, atol=1e-5), (loss, ref)

    print("KERNEL_OK")
</pallas_src>

<mosaic_0001>
module attributes {stable_mosaic.version = 11 : i64} {
  func.func @_dicebce_partials_kernel(%arg0: i32, %arg1: memref<8x128xf32, #tpu.memory_space<vmem>>, %arg2: memref<8x128xf32, #tpu.memory_space<vmem>>, %arg3: memref<24x128xf32, #tpu.memory_space<vmem>>) attributes {dimension_semantics = [#tpu.dimension_semantics<parallel>], iteration_bounds = array<i64: 2>, scalar_prefetch = 0 : i64, scratch_operands = 0 : i64, tpu.core_type = #tpu.core_type<tc>, window_params = [{transform_indices = @transform_0, window_bounds = array<i64: 8, 128>}, {transform_indices = @transform_1, window_bounds = array<i64: 8, 128>}, {transform_indices = @transform_2, window_bounds = array<i64: 24, 128>}]} {
    %cst = arith.constant 0.000000e+00 : f32
    %0 = vector.broadcast %cst : f32 to vector<24x128xf32>
    %c0 = arith.constant 0 : index
    %c0_0 = arith.constant 0 : index
    %1 = vector.load %arg3[%c0, %c0_0] : memref<24x128xf32, #tpu.memory_space<vmem>>, vector<24x128xf32>
    tpu.vector_store %arg3[%c0, %c0_0], %0 {strides = array<i32>} : memref<24x128xf32, #tpu.memory_space<vmem>>, vector<24x128xf32>,
    %c0_i32 = arith.constant 0 : i32
    %c1_i32 = arith.constant 1 : i32
    %2 = arith.muli %c0_i32, %c1_i32 : i32
    %c0_i32_1 = arith.constant 0 : i32
    %3 = arith.addi %c0_i32_1, %2 : i32
    %c8_i32 = arith.constant 8 : i32
    %4 = arith.muli %3, %c8_i32 : i32
    %5 = tpu.assume_multiple %4, 8 : i32
    %6 = arith.index_cast %5 : i32 to index
    %c0_2 = arith.constant 0 : index
    %7 = vector.load %arg1[%6, %c0_2] : memref<8x128xf32, #tpu.memory_space<vmem>>, vector<8x128xf32>
    %8 = arith.index_cast %5 : i32 to index
    %c0_3 = arith.constant 0 : index
    %9 = vector.load %arg2[%8, %c0_3] : memref<8x128xf32, #tpu.memory_space<vmem>>, vector<8x128xf32>
    %c0_4 = arith.constant 0 : index
    %c0_5 = arith.constant 0 : index
    %10 = vector.load %arg3[%c0_4, %c0_5] : memref<24x128xf32, #tpu.memory_space<vmem>>, vector<8x128xf32>
    %11 = arith.mulf %7, %9 : vector<8x128xf32>
    %12 = vector.shape_cast %11 : vector<8x128xf32> to vector<1x8x128xf32>
    %cst_6 = arith.constant dense<0.000000e+00> : vector<8x128xf32>
    %13 = vector.multi_reduction <add>, %12, %cst_6 [0] : vector<1x8x128xf32> to vector<8x128xf32>
    %14 = arith.addf %10, %13 : vector<8x128xf32>
    %c0_7 = arith.constant 0 : index
    %c0_8 = arith.constant 0 : index
    %15 = vector.load %arg3[%c0_7, %c0_8] : memref<24x128xf32, #tpu.memory_space<vmem>>, vector<8x128xf32>
    tpu.vector_store %arg3[%c0_7, %c0_8], %14 {strides = array<i32>} : memref<24x128xf32, #tpu.memory_space<vmem>>, vector<8x128xf32>,
    %c8 = arith.constant 8 : index
    %c0_9 = arith.constant 0 : index
    %16 = vector.load %arg3[%c8, %c0_9] : memref<24x128xf32, #tpu.memory_space<vmem>>, vector<8x128xf32>
    %17 = arith.addf %7, %9 : vector<8x128xf32>
    %18 = vector.shape_cast %17 : vector<8x128xf32> to vector<1x8x128xf32>
    %cst_10 = arith.constant dense<0.000000e+00> : vector<8x128xf32>
    %19 = vector.multi_reduction <add>, %18, %cst_10 [0] : vector<1x8x128xf32> to vector<8x128xf32>
    %20 = arith.addf %16, %19 : vector<8x128xf32>
    %c8_11 = arith.constant 8 : index
    %c0_12 = arith.constant 0 : index
    %21 = vector.load %arg3[%c8_11, %c0_12] : memref<24x128xf32, #tpu.memory_space<vmem>>, vector<8x128xf32>
    tpu.vector_store %arg3[%c8_11, %c0_12], %20 {strides = array<i32>} : memref<24x128xf32, #tpu.memory_space<vmem>>, vector<8x128xf32>,
    %c16 = arith.constant 16 : index
    %c0_13 = arith.constant 0 : index
    %22 = vector.load %arg3[%c16, %c0_13] : memref<24x128xf32, #tpu.memory_space<vmem>>, vector<8x128xf32>
    %23 = math.log %7 : vector<8x128xf32>
    %cst_14 = arith.constant -1.000000e+02 : f32
    %24 = vector.broadcast %cst_14 : f32 to vector<8x128xf32>
    %25 = arith.maximumf %23, %24 : vector<8x128xf32>
    %cst_15 = arith.constant 1.000000e+00 : f32
    %26 = vector.broadcast %cst_15 : f32 to vector<8x128xf32>
    %27 = arith.subf %26, %7 : vector<8x128xf32>
    %28 = math.log %27 : vector<8x128xf32>
    %cst_16 = arith.constant -1.000000e+02 : f32
    %29 = vector.broadcast %cst_16 : f32 to vector<8x128xf32>
    %30 = arith.maximumf %28, %29 : vector<8x128xf32>
    %31 = arith.subf %25, %30 : vector<8x128xf32>
    %32 = arith.mulf %9, %31 : vector<8x128xf32>
    %33 = arith.addf %30, %32 : vector<8x128xf32>
    %cst_17 = arith.constant 0.000000e+00 : f32
    %34 = vector.broadcast %cst_17 : f32 to vector<8x128xf32>
    %35 = arith.subf %34, %33 : vector<8x128xf32>
    %36 = vector.shape_cast %35 : vector<8x128xf32> to vector<1x8x128xf32>
    %cst_18 = arith.constant dense<0.000000e+00> : vector<8x128xf32>
    %37 = vector.multi_reduction <add>, %36, %cst_18 [0] : vector<1x8x128xf32> to vector<8x128xf32>
    %38 = arith.addf %22, %37 : vector<8x128xf32>
    %c16_19 = arith.constant 16 : index
    %c0_20 = arith.constant 0 : index
    %39 = vector.load %arg3[%c16_19, %c0_20] : memref<24x128xf32, #tpu.memory_space<vmem>>, vector<8x128xf32>
    tpu.vector_store %arg3[%c16_19, %c0_20], %38 {strides = array<i32>} : memref<24x128xf32, #tpu.memory_space<vmem>>, vector<8x128xf32>,
    %c1_i32_21 = arith.constant 1 : i32
    return
  }
  func.func @transform_0(%arg0: i32) -> (i32, i32) {
    %c0_i32 = arith.constant 0 : i32
    %c0_i32_0 = arith.constant 0 : i32
    return %arg0, %c0_i32 : i32, i32
  }
  func.func @transform_1(%arg0: i32) -> (i32, i32) {
    %c0_i32 = arith.constant 0 : i32
    %c0_i32_0 = arith.constant 0 : i32
    return %arg0, %c0_i32 : i32, i32
  }
  func.func @transform_2(%arg0: i32) -> (i32, i32) {
    %c0_i32 = arith.constant 0 : i32
    %c0_i32_0 = arith.constant 0 : i32
    return %arg0, %c0_i32 : i32, i32
  }
}

</mosaic_0001>

<bundles_post_ra>
// kernel: dice_bce_loss.1
= control target key start
LH: loop header
LB: loop body
LE: loop exit
PB: predicated region body
PF: predicated region fallthrough
CT: control target
= control target key end

     0   :  { %s303_s9 = smov 0   ;;  %s323_s0 = inlined_call_operand.vmem [shape: f32[16,128], index: 0, kind: input, shape index: {}]   ;;  %s324_s1 = inlined_call_operand.vmem [shape: f32[16,128], index: 1, kind: input, shape index: {}]   ;;  %s325_s2 = inlined_call_operand.vmem [shape: f32[48,128], index: 2, kind: output, shape index: {}]  }
   0x1 LB: > { %s257_s10 = sadd.s32 4294967295, %s286_s9   ;;  %p261_p0 = scmp.ge.s32.totalorder %s286_s9, 1  ;;  %s286_s9 = sphi %s303_s9, %s12_s9  }
   0x2   : > { %p120_p1 = scmp.lt.s32.totalorder %s286_s9, 3 }
   0x4   : > { %p121_p2 = pnand %p261_p0, %p120_p1 }
   0x5   : > { %s153_s11 = smul.u32 (!%p121_p2), 3, %s257_s10  ;;  %p145_p3 = scmp.lt.s32.totalorder (!%p121_p2), %s257_s10, 1 }
   0x6   : > { %124 = sbr.rel (%p121_p2) target bundleno = 43 (0x2b), region = 28 }
   0x7   : > { %p154_p4 = scmp.lt.s32.totalorder (!%p121_p2), %s153_s11, 5 }
   0xd   : > { %s327_s10 = smov (!%p145_p3, %s257_s10), 1  ;;  %s329_s11 = smov (!%p154_p4, %s153_s11), 5 }
   0xe   : > { %s262_s12 = sshll.u32 %s327_s10, 3  ;;  %s264_s16 = sshll.u32 %s329_s11, 3 }
   0xf   : > { %s148_s15 = scalar_lea.vmem %s323_s0, %s262_s12  ;;  %s152_s19 = scalar_lea.vmem %s324_s1, %s262_s12 }
  0x10   : > { %v162_v0 = vld [vmem:[%s148_s15] sm:$0xff]  ;;  %s157_s22 = scalar_lea.vmem %s325_s2, %s264_s16 }
  0x11   : > { %v163_v1 = vld [vmem:[%s152_s19] sm:$0xff]  ;;  %276 = vlog2.f32 %v162_v0  ;;  %v178_v2 = vsub.f32 1.0, %v162_v0 }
  0x12   : > { %v165_v3 = vmul.f32 %v163_v1, %v162_v0  ;;  %v170_v4 = vadd.f32 %v163_v1, %v162_v0 }
  0x13   : > { %278 = vlog2.f32 %v178_v2 }
  0x14   : > { %168 = vst [vmem:[%s157_s22] sm:$0xff] %v165_v3  ;;  %173 = vst [vmem:[%s157_s22 + $0x8] sm:$0xff] %v170_v4 }
  0x1b   : > { %v277_v5 = vpop.eup %276 }
  0x1c   : > { %v176_v6 = vmul.f32 0.6931472, %v277_v5 }
  0x1d   : > { %v279_v7 = vpop.eup %278 }
  0x1e   : > { %v177_v8 = vmax.f32 %v176_v6, -100.0  ;;  %v180_v9 = vmul.f32 0.6931472, %v279_v7 }
  0x20   : > { %v181_v10 = vmax.f32 %v180_v9, -100.0 }
  0x22   : > { %v182_v11 = vsub.f32 %v177_v8, %v181_v10 }
  0x24   : > { %v183_v12 = vmul.f32 %v182_v11, %v163_v1 }
  0x26   : > { %v184_v13 = vadd.f32 %v183_v12, %v181_v10 }
  0x28   : > { %v185_v14 = vsub.f32 0.0, %v184_v13 }
  0x2a   : > { %188 = vst [vmem:[%s157_s22 + $0x10] sm:$0xff] %v185_v14 }
  0x2b PF: > { %s12_s9 = sadd.s32 1, %s286_s9  }
  0x2c   : > { %p9_p5 = scmp.ge.s32.totalorder %s12_s9, 4  }
  0x2e   :  { %11 = sbr.rel (!%p9_p5) target bundleno = 1 (0x1), region = 61 }

</bundles_post_ra>
